<compile_context>
chip_gen: v7x
topology: tpu7x:2x2x1
jax: 0.10.0
libtpu: 0.0.40
codegen_flags: <defaults>
</compile_context>

<pallas_src>
import functools

import jax
import jax.numpy as jnp
from jax.experimental import pallas as pl
from jax.experimental.pallas import tpu as pltpu

_LANES = 128
_SUBLANES = 8
_MAX_TILE_ROWS = 2048   # (2048, 128) f32 tile = 1 MiB per input per grid step


def _duration_loss_kernel(out_ref, tgt_ref, loss_ref, acc_ref, *,
                          clip_val, n_valid, tile_rows, needs_mask):
    i = pl.program_id(0)

    @pl.when(i == 0)
    def _init():
        acc_ref[...] = jnp.zeros_like(acc_ref)

    preds = out_ref[...].astype(jnp.float32)
    tgts = tgt_ref[...].astype(jnp.float32)
    diff = preds - jnp.log(tgts + clip_val)
    sq = diff * diff

    if needs_mask:
        # Exclude wrapper zero-padding (and anything past n_valid) exactly.
        row_ids = jax.lax.broadcasted_iota(jnp.int32, sq.shape, 0)
        col_ids = jax.lax.broadcasted_iota(jnp.int32, sq.shape, 1)
        flat_idx = (i * tile_rows + row_ids) * _LANES + col_ids
        sq = jnp.where(flat_idx < n_valid, sq, 0.0)

    # Per-lane partial sums into the resident accumulator: VPU adds plus one
    # sublane reduce per tile; no per-step scalar reduce / SMEM write.
    acc_ref[...] += jnp.sum(sq, axis=0, keepdims=True)

    @pl.when(i == pl.num_programs(0) - 1)
    def _finalize():
        loss_ref[0, 0] = jnp.sum(acc_ref[...]) * (1.0 / n_valid)


def duration_predictor_loss(outputs, targets, clip_val=1e-08):
    """outputs: (B, T) float (predicted durations, log domain)
       targets: (B, T) int   (ground-truth durations, linear domain)
       returns: scalar float32 MSE loss (reduction='mean')."""
    assert outputs.shape == targets.shape
    n_valid = 1
    for d in outputs.shape:
        n_valid *= int(d)

    # Lane-dense layout: flatten and pad to (rows, 128) with rows a multiple
    # of the tile height so every block the grid sees is completely full.
    rows = pl.cdiv(n_valid, _LANES)
    rows = pl.cdiv(rows, _SUBLANES) * _SUBLANES
    tile_rows = min(rows, _MAX_TILE_ROWS)
    rows = pl.cdiv(rows, tile_rows) * tile_rows
    padded = rows * _LANES
    grid = rows // tile_rows

    out_flat = outputs.reshape(-1)
    tgt_flat = targets.reshape(-1)
    if padded != n_valid:
        out_flat = jnp.pad(out_flat, (0, padded - n_valid))
        tgt_flat = jnp.pad(tgt_flat, (0, padded - n_valid))
    out2d = out_flat.reshape(rows, _LANES)
    tgt2d = tgt_flat.reshape(rows, _LANES)

    kernel = functools.partial(
        _duration_loss_kernel,
        clip_val=float(clip_val),
        n_valid=n_valid,
        tile_rows=tile_rows,
        needs_mask=(padded != n_valid),
    )

    loss = pl.pallas_call(
        kernel,
        out_shape=jax.ShapeDtypeStruct((1, 1), jnp.float32),
        grid_spec=pltpu.PrefetchScalarGridSpec(
            num_scalar_prefetch=0,
            grid=(grid,),
            in_specs=[
                pl.BlockSpec((tile_rows, _LANES), lambda i: (i, 0)),
                pl.BlockSpec((tile_rows, _LANES), lambda i: (i, 0)),
            ],
            out_specs=pl.BlockSpec((1, 1), lambda i: (0, 0),
                                   memory_space=pltpu.SMEM),
            scratch_shapes=[pltpu.VMEM((1, _LANES), jnp.float32)],
        ),
        compiler_params=pltpu.CompilerParams(
            dimension_semantics=("arbitrary",),
            vmem_limit_bytes=32 * 1024 * 1024,
        ),
    )(out2d, tgt2d)
    return loss[0, 0]


def _reference(outputs, targets, clip_val=1e-08):
    log_t = jnp.log(targets.astype(jnp.float32) + clip_val)
    return jnp.mean((outputs.astype(jnp.float32) - log_t) ** 2)


if __name__ == "__main__":
    key = jax.random.PRNGKey(0)
    k1, k2, k3, k4 = jax.random.split(key, 4)

    # Small (B, T) case matching the module's convention.
    B, T = 2, 8
    outputs = jax.random.normal(k1, (B, T), dtype=jnp.float32)
    targets = jax.random.randint(k2, (B, T), minval=0, maxval=20, dtype=jnp.int32)

    loss = jax.block_until_ready(duration_predictor_loss(outputs, targets))
    ref = _reference(outputs, targets)
    assert jnp.allclose(loss, ref, rtol=1e-5, atol=1e-5), (loss, ref)

    # Larger ragged case to exercise the multi-step tiled-reduction path
    # (grid of 2 tiles, wrapper padding masked out).
    B2, T2 = 4, 70000
    outputs2 = jax.random.normal(k3, (B2, T2), dtype=jnp.float32)
    targets2 = jax.random.randint(k4, (B2, T2), minval=0, maxval=50, dtype=jnp.int32)

    loss2 = jax.block_until_ready(duration_predictor_loss(outputs2, targets2))
    ref2 = _reference(outputs2, targets2)
    assert jnp.allclose(loss2, ref2, rtol=1e-4, atol=1e-4), (loss2, ref2)

    print("KERNEL_OK")
</pallas_src>

<mosaic_0001>
module attributes {stable_mosaic.version = 11 : i64} {
  func.func @_duration_loss_kernel(%arg0: i32, %arg1: memref<8x128xf32, #tpu.memory_space<vmem>>, %arg2: memref<8x128xi32, #tpu.memory_space<vmem>>, %arg3: memref<1x1xf32, #tpu.memory_space<smem>>, %arg4: memref<1x128xf32, #tpu.memory_space<vmem>>) attributes {dimension_semantics = [#tpu.dimension_semantics<arbitrary>], iteration_bounds = array<i64: 1>, scalar_prefetch = 0 : i64, scratch_operands = 1 : i64, tpu.core_type = #tpu.core_type<tc>, window_params = [{transform_indices = @transform_0, window_bounds = array<i64: 8, 128>}, {transform_indices = @transform_1, window_bounds = array<i64: 8, 128>}, {transform_indices = @transform_2, window_bounds = array<i64: 1, 1>}]} {
    %c0_i32 = arith.constant 0 : i32
    %0 = arith.cmpi eq, %arg0, %c0_i32 : i32
    %1 = arith.extui %0 : i1 to i32
    %c0_i32_0 = arith.constant 0 : i32
    %2 = arith.cmpi ne, %1, %c0_i32_0 : i32
    scf.if %2 {
      %cst_12 = arith.constant 0.000000e+00 : f32
      %31 = vector.broadcast %cst_12 : f32 to vector<1x128xf32>
      %c0_13 = arith.constant 0 : index
      %c0_14 = arith.constant 0 : index
      %32 = vector.load %arg4[%c0_13, %c0_14] : memref<1x128xf32, #tpu.memory_space<vmem>>, vector<1x128xf32>
      tpu.vector_store %arg4[%c0_13, %c0_14], %31 {strides = array<i32>} : memref<1x128xf32, #tpu.memory_space<vmem>>, vector<1x128xf32>,
    } else {
    }
    %c0 = arith.constant 0 : index
    %c0_1 = arith.constant 0 : index
    %3 = vector.load %arg1[%c0, %c0_1] : memref<8x128xf32, #tpu.memory_space<vmem>>, vector<8x128xf32>
    %c0_2 = arith.constant 0 : index
    %c0_3 = arith.constant 0 : index
    %4 = vector.load %arg2[%c0_2, %c0_3] : memref<8x128xi32, #tpu.memory_space<vmem>>, vector<8x128xi32>
    %5 = arith.sitofp %4 : vector<8x128xi32> to vector<8x128xf32>
    %cst = arith.constant 9.99999993E-9 : f32
    %6 = vector.broadcast %cst : f32 to vector<8x128xf32>
    %7 = arith.addf %5, %6 : vector<8x128xf32>
    %8 = math.log %7 : vector<8x128xf32>
    %9 = arith.subf %3, %8 : vector<8x128xf32>
    %10 = arith.mulf %9, %9 : vector<8x128xf32>
    %11 = tpu.iota {dimensions = array<i32: 0>} : vector<8x128xi32>
    %12 = tpu.iota {dimensions = array<i32: 1>} : vector<8x128xi32>
    %c8_i32 = arith.constant 8 : i32
    %13 = arith.muli %arg0, %c8_i32 : i32
    %14 = vector.broadcast %13 : i32 to vector<8x128xi32>
    %15 = arith.addi %14, %11 : vector<8x128xi32>
    %c128_i32 = arith.constant 128 : i32
    %16 = vector.broadcast %c128_i32 : i32 to vector<8x128xi32>
    %17 = arith.muli %15, %16 : vector<8x128xi32>
    %18 = arith.addi %17, %12 : vector<8x128xi32>
    %c16_i32 = arith.constant 16 : i32
    %19 = vector.broadcast %c16_i32 : i32 to vector<8x128xi32>
    %20 = arith.cmpi slt, %18, %19 : vector<8x128xi32>
    %cst_4 = arith.constant 0.000000e+00 : f32
    %21 = vector.broadcast %cst_4 : f32 to vector<8x128xf32>
    %22 = arith.select %20, %10, %21 : vector<8x128xi1>, vector<8x128xf32>
    %c0_5 = arith.constant 0 : index
    %c0_6 = arith.constant 0 : index
    %23 = vector.load %arg4[%c0_5, %c0_6] : memref<1x128xf32, #tpu.memory_space<vmem>>, vector<1x128xf32>
    %cst_7 = arith.constant dense<0.000000e+00> : vector<128xf32>
    %24 = vector.multi_reduction <add>, %22, %cst_7 [0] : vector<8x128xf32> to vector<128xf32>
    %25 = vector.shape_cast %24 : vector<128xf32> to vector<1x128xf32>
    %26 = arith.addf %23, %25 : vector<1x128xf32>
    %c0_8 = arith.constant 0 : index
    %c0_9 = arith.constant 0 : index
    %27 = vector.load %arg4[%c0_8, %c0_9] : memref<1x128xf32, #tpu.memory_space<vmem>>, vector<1x128xf32>
    tpu.vector_store %arg4[%c0_8, %c0_9], %26 {strides = array<i32>} : memref<1x128xf32, #tpu.memory_space<vmem>>, vector<1x128xf32>,
    %c0_i32_10 = arith.constant 0 : i32
    %28 = arith.cmpi eq, %arg0, %c0_i32_10 : i32
    %29 = arith.extui %28 : i1 to i32
    %c0_i32_11 = arith.constant 0 : i32
    %30 = arith.cmpi ne, %29, %c0_i32_11 : i32
    scf.if %30 {
      %c0_12 = arith.constant 0 : index
      %c0_13 = arith.constant 0 : index
      %31 = vector.load %arg4[%c0_12, %c0_13] : memref<1x128xf32, #tpu.memory_space<vmem>>, vector<1x128xf32>
      %32 = vector.shape_cast %31 : vector<1x128xf32> to vector<1x1x128xf32>
      %cst_14 = arith.constant dense<0.000000e+00> : vector<1xf32>
      %33 = vector.multi_reduction <add>, %32, %cst_14 [1, 2] : vector<1x1x128xf32> to vector<1xf32>
      %34 = vector.shape_cast %33 : vector<1xf32> to vector<1x1x1xf32>
      %35 = vector.extract %34[0, 0, 0] : f32 from vector<1x1x1xf32>
      %cst_15 = arith.constant 6.250000e-02 : f32
      %36 = arith.mulf %35, %cst_15 : f32
      %c0_16 = arith.constant 0 : index
      %c0_17 = arith.constant 0 : index
      %37 = memref.load %arg3[%c0_16, %c0_17] : memref<1x1xf32, #tpu.memory_space<smem>>
      memref.store %36, %arg3[%c0_16, %c0_17] : memref<1x1xf32, #tpu.memory_space<smem>>
    } else {
    }
    return
  }
  func.func @transform_0(%arg0: i32) -> (i32, i32) {
    %c0_i32 = arith.constant 0 : i32
    %c0_i32_0 = arith.constant 0 : i32
    return %arg0, %c0_i32 : i32, i32
  }
  func.func @transform_1(%arg0: i32) -> (i32, i32) {
    %c0_i32 = arith.constant 0 : i32
    %c0_i32_0 = arith.constant 0 : i32
    return %arg0, %c0_i32 : i32, i32
  }
  func.func @transform_2(%arg0: i32) -> (i32, i32) {
    %c0_i32 = arith.constant 0 : i32
    %c0_i32_0 = arith.constant 0 : i32
    %c0_i32_1 = arith.constant 0 : i32
    return %c0_i32, %c0_i32_0 : i32, i32
  }
}

</mosaic_0001>

<bundles_post_ra>
// kernel: tpu_custom_call.1
= control target key start
LH: loop header
LB: loop body
LE: loop exit
PB: predicated region body
PF: predicated region fallthrough
CT: control target
= control target key end

     0   :  { %7 = vsyncpa [#allocation4], 0  ;;  %s225_s0 = inlined_call_operand.hbm [shape: f32[8,128], index: 0, kind: input, shape index: {}]   ;;  %s226_s1 = inlined_call_operand.hbm [shape: s32[8,128], index: 1, kind: input, shape index: {}]   ;;  %s227_s2 = inlined_call_operand.hbm [shape: f32[1,1], index: 2, kind: output, shape index: {}]  }
   0x1   :  { %8 = vsyncpa [#allocation7], 0 }
   0x2   :  { %9 = vsyncpa [#allocation5], 0  ;;  %s170_s9 = smov [#allocation3]   ;;  %s171_s11 = smov [#allocation6]  }
   0x3   :  { %s16_s10 = sshll.u32 %s170_s9, 4  ;;  %s26_s12 = sshll.u32 %s171_s11, 4  ;;  %s17_s10 = int_to_ptr.vmem [resolvable:$true] %s16_s10  ;;  %s27_s12 = int_to_ptr.vmem [resolvable:$true] %s26_s12 }
   0x4   :  { %s110_s15 = scalar_lea.hbm %s225_s0, 128 }
   0x5   :  { %p111_p0 = scmp.ne.s32.totalorder %s225_s0, %s110_s15  ;;  %p114_p1 = scmp.lt.u32.totalorder %s110_s15, %s225_s0 }
   0x7   :  { %p116_p2 = pnand %p114_p1, %p111_p0 }
   0x9   :  { %119 = shalt.err (!%p116_p2)
}
   0xa   :  { %s120_s20 = scalar_lea.vmem %s17_s10, 128  ;;  %p125_p4 = scmp.lt.s32.totalorder %s17_s10, %s17_s10 }
   0xb   :  { %p121_p3 = scmp.ne.s32.totalorder %s17_s10, %s120_s20  ;;  %p126_p5 = scmp.lt.s32.totalorder %s120_s20, %s120_s20 }
   0xd   :  { %p127_p6 = por %p126_p5, %p125_p4 }
   0xf   :  { %p128_p7 = pnand %p127_p6, %p121_p3 }
  0x11   :  { %131 = shalt.err (!%p128_p7)
}
  0x12   :  { %19 = dma.hbm_to_vmem [thread:$0]  %s225_s0, 128, %s17_s10, [#allocation4]  }
  0x13   :  { %s132_s25 = scalar_lea.hbm %s226_s1, 128 }
  0x14   :  { %p133_p8 = scmp.ne.s32.totalorder %s226_s1, %s132_s25  ;;  %p136_p9 = scmp.lt.u32.totalorder %s132_s25, %s226_s1 }
  0x16   :  { %p138_p10 = pnand %p136_p9, %p133_p8 }
  0x18   :  { %141 = shalt.err (!%p138_p10)
}
  0x19   :  { %s142_s30 = scalar_lea.vmem %s27_s12, 128  ;;  %p147_p12 = scmp.lt.s32.totalorder %s27_s12, %s27_s12 }
  0x1a   :  { %p143_p11 = scmp.ne.s32.totalorder %s27_s12, %s142_s30  ;;  %p148_p13 = scmp.lt.s32.totalorder %s142_s30, %s142_s30 }
  0x1c   :  { %p149_p0 = por %p148_p13, %p147_p12 }
  0x1e   :  { %p150_p1 = pnand %p149_p0, %p143_p11 }
  0x20   :  { %153 = shalt.err (!%p150_p1)
}
  0x21   :  { %29 = dma.hbm_to_vmem [thread:$0]  %s226_s1, 128, %s27_s12, [#allocation7]  }
  0x22   :  { %164 = dma.done.wait [#allocation4], 128  }
  0x23   :  { %165 = vsyncadd [#allocation4], 4294967168 }
  0x24   :  { %166 = dma.done.wait [#allocation7], 128  }
  0x25   :  { %167 = vsyncadd [#allocation7], 4294967168  ;;  %v172_v0 = vmov 0.0   ;;  %v42_v1 = vld [vmem:[#allocation6] sm:$0xff]  ;;  %v49_v4 = vlaneseq  ;;  %v41_v9 = vld [vmem:[#allocation3] sm:$0xff]  ;;  %vm73_vm1 = vcmask 1040384  }
  0x26   :  { %40 = vst [vmem:[#allocation2] sm:$0x1] %v172_v0  ;;  %v43_v2 = vcvt.s32.f32 %v42_v1  ;;  %s154_s7 = scalar_lea.hbm %s227_s2, 16 }
  0x27   :  { %v50_v5 = vshrl.u32 %v49_v4, 7  ;;  %v52_v6 = vand.u32 127, %v49_v4  ;;  %p155_p2 = scmp.ne.s32.totalorder %s227_s2, %s154_s7  ;;  %p158_p3 = scmp.lt.u32.totalorder %s154_s7, %s227_s2 }
  0x28   :  { %v44_v3 = vadd.f32 1e-08, %v43_v2 }
  0x29   :  { %v56_v7 = vmul.u32 128, %v50_v5  ;;  %p160_p4 = pnand %p158_p3, %p155_p2 }
  0x2a   :  { %108 = vlog2.f32 %v44_v3 }
  0x2b   :  { %v57_v10 = vadd.s32 %v56_v7, %v52_v6 }
  0x2d   :  { %vm58_vm0 = vcmp.lt.s32.totalorder %v57_v10, 16  ;;  %v60_v20 = vld [vmem:[#allocation2] sm:$0x1] }
  0x34   :  { %v109_v8 = vpop.eup %108 }
  0x35   :  { %v46_v11 = vmul.f32 0.6931472, %v109_v8 }
  0x37   :  { %v47_v12 = vsub.f32 %v41_v9, %v46_v11 }
  0x39   :  { %v48_v13 = vmul.f32 %v47_v12, %v47_v12 }
  0x3b   :  { %v59_v14 = vsel %vm58_vm0, %v48_v13, 0.0 }
  0x3c   :  { %v61_v15 = vrot.slane %v59_v14, 4 }
  0x3e   :  { %v62_v16 = vadd.f32 %v61_v15, %v59_v14 }
  0x40   :  { %v63_v17 = vrot.slane %v62_v16, 2 }
  0x42   :  { %v64_v18 = vadd.f32 %v63_v17, %v62_v16 }
  0x44   :  { %v65_v19 = vrot.slane %v64_v18, 1 }
  0x46   :  { %v66_v21 = vadd.f32 %v65_v19, %v64_v18 }
  0x48   :  { %v67_v22 = vadd.f32 %v66_v21, %v60_v20 }
  0x4a   :  { %68 = vst [vmem:[#allocation2] sm:$0x1] %v67_v22 }
  0x51   :  { %v72_v23 = vld [vmem:[#allocation2] sm:$0x1] }
  0x52   :  { %v74_v24 = vsel %vm73_vm1, %v72_v23, 0.0 }
  0x53   :  { %75 = vadd.xlane.f32.xlu0 %v74_v24 }
  0xe0   :  { %v76_v25 = vpop.xlane.xlu0 %75 }
  0xe1   :  { %v77_v26 = vrot.slane %v76_v25, 4 }
  0xe3   :  { %v78_v27 = vadd.f32 %v77_v26, %v76_v25 }
  0xe5   :  { %v79_v28 = vrot.slane %v78_v27, 2 }
  0xe7   :  { %v80_v29 = vadd.f32 %v79_v28, %v78_v27 }
  0xe9   :  { %v81_v30 = vrot.slane %v80_v29, 1 }
  0xeb   :  { %v82_v31 = vadd.f32 %v81_v30, %v80_v29 }
  0xed   :  { %102 = vpush %v82_v31 }
 0x11e   :  { %s103_s1 = spop %102 }
 0x11f   :  { %s84_s4 = smul.f32 0.0625, %s103_s1 }
 0x121   :  { %86 = sst [smem:[#allocation8]] %s84_s4 }
 0x122   :  { %163 = shalt.err (!%p160_p4)
}
 0x123   :  { %s173_s12 = smov [#allocation8]  }
 0x124   :  { %94 = dma.smem_to_hbm %s173_s12, 16, %s227_s2, [#allocation5]  }
 0x125   :  { %168 = dma.done.wait [#allocation5], 16  }
 0x126   :  { %169 = vsyncadd [#allocation5], 4294967280 }
 0x127   :  { %98 = sfence }
 0x128   :  { %99 = vsyncpa [#allocation4], 1 }
 0x129   :  { %100 = vsyncpa [#allocation7], 1 }
 0x12a   :  { %101 = vsyncpa [#allocation5], 1 }

</bundles_post_ra>
